<compile_context>
chip_gen: v7x
topology: tpu7x:2x2x1
jax: 0.10.0
libtpu: 0.0.40
codegen_flags: <defaults>
</compile_context>

<pallas_src>
import jax
import jax.numpy as jnp
import numpy as np
from jax import lax
from jax.experimental import pallas as pl
from jax.experimental.pallas import tpu as pltpu

LANE = 128  # TPU lane width; feature dims and N are padded to multiples of this.


# ------------------------------------------------------------------------- helpers
def _pad2d(x, rows, cols):
    r, c = x.shape
    return jnp.pad(x, ((0, rows - r), (0, cols - c)))


def _vmem_limit_bytes():
    """~75% of physical VMEM (~48 MiB on v7x, ~96 MiB on v5e/v6e); fallback 64 MiB."""
    try:
        cap = getattr(pltpu.get_tpu_info(), "vmem_capacity_bytes", None)
        if cap:
            return int(min(max(cap * 3 // 4, 32 * 1024 * 1024), 100 * 1024 * 1024))
    except Exception:
        pass
    return 64 * 1024 * 1024


def _row_tile(n_pad):
    """Largest row tile in {128,256,512} dividing n_pad (n_pad is a multiple of 128)."""
    return max(t for t in (128, 256, 512) if n_pad % t == 0)


# ------------------------------------------------------------------- fused kernel
def _fused_sage_kernel(a_ref, dinv_ref, x_ref, w1_ref, b1_ref,
                       w2_ref, b2_ref, w3_ref, b3_ref, o_ref, h1_ref):
    """Whole forward pass with everything resident in VMEM.

    a_ref:  (n_pad, n_pad) int8 neighbour counts
    dinv:   (n_pad, 1)     f32 exact 1/deg row scale
    x_ref:  (n_pad, 128)   bf16 features
    w1/w2:  (256, 128)     bf16 fused [W_self; W_neigh] slabs, b*: (1,128) f32
    w3:     (128, 128)     bf16, o_ref: (n_pad, 128) f32, h1_ref: (n_pad,128) bf16 scratch
    """
    n_pad = a_ref.shape[0]
    tm = _row_tile(n_pad)
    n_tiles = n_pad // tm
    unroll = n_tiles <= 8

    def _mean_agg(i, feat_ref):
        row0 = pl.multiple_of(i * tm, tm)
        # int8 counts -> bf16 right before the MXU (0/1 counts are exact in bf16).
        a_t = a_ref[pl.ds(row0, tm), :].astype(jnp.float32).astype(jnp.bfloat16)
        agg = jnp.dot(a_t, feat_ref[...], preferred_element_type=jnp.float32)
        return row0, agg * dinv_ref[pl.ds(row0, tm), :]          # exact f32 1/deg scale

    # ---- Layer 1: H1 = relu([X | mean_agg(X)] @ [W1_self; W1_neigh] + b1)
    def _layer1(i, carry):
        row0, agg = _mean_agg(i, x_ref)
        x_t = x_ref[pl.ds(row0, tm), :]
        cat = jnp.concatenate([x_t, agg.astype(x_t.dtype)], axis=-1)     # (tm, 256)
        h = jnp.dot(cat, w1_ref[...], preferred_element_type=jnp.float32) + b1_ref[...]
        h1_ref[pl.ds(row0, tm), :] = jnp.maximum(h, 0.0).astype(h1_ref.dtype)
        return carry

    lax.fori_loop(0, n_tiles, _layer1, 0, unroll=unroll)

    # ---- Layer 2 + final Linear (H1 read straight from VMEM scratch, no HBM trip).
    def _layer2(i, carry):
        row0, agg = _mean_agg(i, h1_ref)
        h1_t = h1_ref[pl.ds(row0, tm), :]
        cat = jnp.concatenate([h1_t, agg.astype(h1_t.dtype)], axis=-1)   # (tm, 256)
        h2 = jnp.maximum(
            jnp.dot(cat, w2_ref[...], preferred_element_type=jnp.float32) + b2_ref[...], 0.0)
        o = jnp.dot(h2.astype(w3_ref.dtype), w3_ref[...],
                    preferred_element_type=jnp.float32) + b3_ref[...]
        o_ref[pl.ds(row0, tm), :] = o
        return carry

    lax.fori_loop(0, n_tiles, _layer2, 0, unroll=unroll)


# --------------------------------------------------- row-tiled fallback (large graphs)
def _layer1_tiled_kernel(a_ref, dinv_ref, x_ref, w1_ref, b1_ref, h1_ref):
    tm = h1_ref.shape[0]
    row0 = pl.multiple_of(pl.program_id(0) * tm, tm)
    a_t = a_ref[...].astype(jnp.float32).astype(jnp.bfloat16)            # (tm, n_pad)
    agg = jnp.dot(a_t, x_ref[...], preferred_element_type=jnp.float32) * dinv_ref[...]
    # NOTE: this global-offset slice is only valid because x_ref uses a FULL-slab
    # BlockSpec with a constant index_map; never row-tile x_ref.
    x_t = x_ref[pl.ds(row0, tm), :]
    cat = jnp.concatenate([x_t, agg.astype(x_t.dtype)], axis=-1)
    h = jnp.dot(cat, w1_ref[...], preferred_element_type=jnp.float32) + b1_ref[...]
    h1_ref[...] = jnp.maximum(h, 0.0).astype(h1_ref.dtype)


def _layer2_tiled_kernel(a_ref, dinv_ref, h1_ref, w2_ref, b2_ref, w3_ref, b3_ref, o_ref):
    tm = o_ref.shape[0]
    row0 = pl.multiple_of(pl.program_id(0) * tm, tm)
    a_t = a_ref[...].astype(jnp.float32).astype(jnp.bfloat16)
    agg = jnp.dot(a_t, h1_ref[...], preferred_element_type=jnp.float32) * dinv_ref[...]
    # NOTE: valid only because h1_ref is the full slab (constant index_map).
    h1_t = h1_ref[pl.ds(row0, tm), :]
    cat = jnp.concatenate([h1_t, agg.astype(h1_t.dtype)], axis=-1)
    h2 = jnp.maximum(
        jnp.dot(cat, w2_ref[...], preferred_element_type=jnp.float32) + b2_ref[...], 0.0)
    o_ref[...] = (jnp.dot(h2.astype(w3_ref.dtype), w3_ref[...],
                          preferred_element_type=jnp.float32) + b3_ref[...])


# ------------------------------------------------------------------ one-time prepare
def prepare_graph(edge_index, n):
    """int8 neighbour-count matrix + exact f32 1/deg, lane-padded. Build ONCE."""
    n_pad = ((n + LANE - 1) // LANE) * LANE
    src, dst = edge_index[0], edge_index[1]
    counts = jnp.zeros((n, n), jnp.float32).at[dst, src].add(1.0)
    deg = jnp.sum(counts, axis=1, keepdims=True)
    inv_deg = 1.0 / jnp.maximum(deg, 1.0)                       # exact f32 (no bf16 rounding)
    # int8 is fine for edge multiplicities < 128 (always 0/1 for simple graphs).
    a_i8 = _pad2d(counts, n_pad, n_pad).astype(jnp.int8)
    dinv = jnp.pad(inv_deg, ((0, n_pad - n), (0, 0)))           # (n_pad, 1) f32
    return a_i8, dinv, n_pad


def prepare_params(params, dtype=jnp.bfloat16):
    """Pad + stack weights into fused (256,128) slabs. Build ONCE."""
    w1 = jnp.concatenate([_pad2d(params["w1_self"], LANE, LANE),
                          _pad2d(params["w1_neigh"], LANE, LANE)], axis=0).astype(dtype)
    w2 = jnp.concatenate([_pad2d(params["w2_self"], LANE, LANE),
                          _pad2d(params["w2_neigh"], LANE, LANE)], axis=0).astype(dtype)
    w3 = _pad2d(params["w3"], LANE, LANE).astype(dtype)
    return {
        "w1": w1, "b1": _pad2d(params["b1"][None, :], 1, LANE).astype(jnp.float32),
        "w2": w2, "b2": _pad2d(params["b2"][None, :], 1, LANE).astype(jnp.float32),
        "w3": w3, "b3": _pad2d(params["b3"][None, :], 1, LANE).astype(jnp.float32),
    }


def prepare_features(x, n_pad, dtype=jnp.bfloat16):
    return _pad2d(x.astype(jnp.float32), n_pad, LANE).astype(dtype)


# ------------------------------------------------------------------------- forward
def _pick_fallback_tile(n_pad, vmem_limit):
    for tm in (512, 256, 128):
        if n_pad % tm:
            continue
        need = (2 * tm * n_pad            # double-buffered int8 A tile
                + n_pad * LANE * 2        # resident X / H1 slab (bf16)
                + 2 * tm * LANE * 4       # double-buffered output tile (f32)
                + 2 * tm * 4              # dinv tile
                + 512 * 1024)             # weights + headroom
        # >=2 grid steps so the "parallel" axis can shard across v7x's two TensorCores.
        if n_pad // tm >= 2 and need <= int(0.7 * vmem_limit):
            return tm
    return 128


def _two_pass_forward(a_i8, dinv, x_pad, prep, n, vmem_limit):
    n_pad = a_i8.shape[0]
    tm = _pick_fallback_tile(n_pad, vmem_limit)
    grid = (n_pad // tm,)
    cparams = pltpu.CompilerParams(dimension_semantics=("parallel",),
                                   vmem_limit_bytes=vmem_limit)

    def full(shape):
        return pl.BlockSpec(shape, lambda i: (0, 0))

    row_tile = pl.BlockSpec((tm, LANE), lambda i: (i, 0))
    a_tile = pl.BlockSpec((tm, n_pad), lambda i: (i, 0))
    dinv_tile = pl.BlockSpec((tm, 1), lambda i: (i, 0))

    h1 = pl.pallas_call(
        _layer1_tiled_kernel,
        out_shape=jax.ShapeDtypeStruct((n_pad, LANE), jnp.bfloat16),
        grid=grid,
        in_specs=[a_tile, dinv_tile, full((n_pad, LANE)),
                  full((2 * LANE, LANE)), full((1, LANE))],
        out_specs=row_tile,
        compiler_params=cparams,
    )(a_i8, dinv, x_pad, prep["w1"], prep["b1"])

    out = pl.pallas_call(
        _layer2_tiled_kernel,
        out_shape=jax.ShapeDtypeStruct((n_pad, LANE), jnp.float32),
        grid=grid,
        in_specs=[a_tile, dinv_tile, full((n_pad, LANE)),
                  full((2 * LANE, LANE)), full((1, LANE)),
                  full((LANE, LANE)), full((1, LANE))],
        out_specs=row_tile,
        compiler_params=cparams,
    )(a_i8, dinv, h1, prep["w2"], prep["b2"], prep["w3"], prep["b3"])

    return out[:n, :1]


def sage_forward(a_i8, dinv, x_pad, prep, n):
    n_pad = a_i8.shape[0]
    vmem_limit = _vmem_limit_bytes()

    # Fused-path VMEM budget: A(int8) + X(bf16) + H1(bf16) + OUT(f32) + dinv + weights.
    fused_bytes = (n_pad * n_pad
                   + n_pad * LANE * (2 + 2 + 4) + n_pad * 4
                   + 3 * 2 * LANE * LANE * 2 + 3 * LANE * 4)
    if fused_bytes <= int(0.75 * vmem_limit):
        out = pl.pallas_call(
            _fused_sage_kernel,
            out_shape=jax.ShapeDtypeStruct((n_pad, LANE), jnp.float32),
            scratch_shapes=[pltpu.VMEM((n_pad, LANE), jnp.bfloat16)],   # resident H1
            compiler_params=pltpu.CompilerParams(vmem_limit_bytes=vmem_limit),
        )(a_i8, dinv, x_pad, prep["w1"], prep["b1"],
          prep["w2"], prep["b2"], prep["w3"], prep["b3"])
        return out[:n, :1]

    # Dense A too big for VMEM: fall back to the row-tiled two-call pipeline.
    return _two_pass_forward(a_i8, dinv, x_pad, prep, n, vmem_limit)


def sage_model_forward(x, edge_index, params):
    """Convenience wrapper (prepare + forward). For repeated inference on a static
    graph, call prepare_* once and reuse the results with sage_forward."""
    n = x.shape[0]
    a_i8, dinv, n_pad = prepare_graph(edge_index, n)
    x_pad = prepare_features(x, n_pad)
    prep = prepare_params(params)
    return sage_forward(a_i8, dinv, x_pad, prep, n)


# ------------------------------------------------------------------------ reference
def sage_model_reference(x, edge_index, params):
    """Plain-JAX f32 reference: SAGEConv(mean): W_s x + W_n mean(x_N) + b."""
    n = x.shape[0]
    src, dst = edge_index[0], edge_index[1]
    adj = jnp.zeros((n, n), jnp.float32).at[dst, src].add(1.0)
    deg = jnp.sum(adj, axis=1, keepdims=True)
    a = adj / jnp.maximum(deg, 1.0)
    h1 = jax.nn.relu(x @ params["w1_self"] + (a @ x) @ params["w1_neigh"] + params["b1"])
    h2 = jax.nn.relu(h1 @ params["w2_self"] + (a @ h1) @ params["w2_neigh"] + params["b2"])
    return h2 @ params["w3"] + params["b3"]


if __name__ == "__main__":
    key = jax.random.PRNGKey(0)
    ks = jax.random.split(key, 12)

    N, E = 16, 48  # small synthetic traffic-sensor graph
    x = jax.random.normal(ks[0], (N, 1), jnp.float32)
    src = jax.random.randint(ks[1], (E,), 0, N)
    dst = jax.random.randint(ks[2], (E,), 0, N)
    edge_index = jnp.stack([src, dst]).astype(jnp.int32)

    # Deterministic params (shapes from SAGEConv(1,32), SAGEConv(32,16), Linear(16,1)).
    params = {
        "w1_self":  0.2 * jax.random.normal(ks[3], (1, 32), jnp.float32),
        "w1_neigh": 0.2 * jax.random.normal(ks[4], (1, 32), jnp.float32),
        "b1":       0.1 * jax.random.normal(ks[5], (32,), jnp.float32),
        "w2_self":  0.2 * jax.random.normal(ks[6], (32, 16), jnp.float32),
        "w2_neigh": 0.2 * jax.random.normal(ks[7], (32, 16), jnp.float32),
        "b2":       0.1 * jax.random.normal(ks[8], (16,), jnp.float32),
        "w3":       0.2 * jax.random.normal(ks[9], (16, 1), jnp.float32),
        "b3":       0.1 * jax.random.normal(ks[10], (1,), jnp.float32),
    }

    # Hoisted one-time preprocessing (static graph / static weights).
    a_i8, dinv, n_pad = prepare_graph(edge_index, N)
    x_pad = prepare_features(x, n_pad)
    prep = prepare_params(params)

    out = jax.block_until_ready(sage_forward(a_i8, dinv, x_pad, prep, N))
    ref = jax.block_until_ready(sage_model_reference(x, edge_index, params))

    assert out.shape == (N, 1), out.shape
    # bf16 features/weights with f32 accumulation and exact f32 1/deg: relaxed tolerance.
    assert np.allclose(np.asarray(out), np.asarray(ref), atol=3e-2, rtol=3e-2), (
        np.max(np.abs(np.asarray(out) - np.asarray(ref))))
    print("KERNEL_OK")
</pallas_src>

<mosaic_0001>
module attributes {stable_mosaic.version = 11 : i64} {
  func.func @_fused_sage_kernel(%arg0: memref<128x128xi8, #tpu.memory_space<vmem>>, %arg1: memref<128x1xf32, #tpu.memory_space<vmem>>, %arg2: memref<128x128xbf16, #tpu.memory_space<vmem>>, %arg3: memref<256x128xbf16, #tpu.memory_space<vmem>>, %arg4: memref<1x128xf32, #tpu.memory_space<vmem>>, %arg5: memref<256x128xbf16, #tpu.memory_space<vmem>>, %arg6: memref<1x128xf32, #tpu.memory_space<vmem>>, %arg7: memref<128x128xbf16, #tpu.memory_space<vmem>>, %arg8: memref<1x128xf32, #tpu.memory_space<vmem>>, %arg9: memref<128x128xf32, #tpu.memory_space<vmem>>, %arg10: memref<128x128xbf16, #tpu.memory_space<vmem>>) attributes {dimension_semantics = [], scalar_prefetch = 0 : i64, scratch_operands = 1 : i64, tpu.core_type = #tpu.core_type<tc>} {
    %c0_i32 = arith.constant 0 : i32
    %c128_i32 = arith.constant 128 : i32
    %0 = arith.muli %c0_i32, %c128_i32 : i32
    %1 = tpu.assume_multiple %0, 128 : i32
    %2 = arith.index_cast %1 : i32 to index
    %c0 = arith.constant 0 : index
    %3 = vector.load %arg0[%2, %c0] : memref<128x128xi8, #tpu.memory_space<vmem>>, vector<128x128xi8>
    %4 = arith.sitofp %3 : vector<128x128xi8> to vector<128x128xf32>
    %5 = arith.truncf %4 : vector<128x128xf32> to vector<128x128xbf16>
    %c0_0 = arith.constant 0 : index
    %c0_1 = arith.constant 0 : index
    %6 = vector.load %arg2[%c0_0, %c0_1] : memref<128x128xbf16, #tpu.memory_space<vmem>>, vector<128x128xbf16>
    %cst = arith.constant dense<0.000000e+00> : vector<128x128xf32>
    %7 = tpu.matmul %5, %6, %cst {dimension_numbers = #tpu.dot_dimension_numbers<[1], [0], [0], [1], [0, 0, 1, 1], [], []>} : vector<128x128xbf16>, vector<128x128xbf16>, vector<128x128xf32> -> vector<128x128xf32>
    %8 = arith.index_cast %1 : i32 to index
    %c0_2 = arith.constant 0 : index
    %9 = vector.load %arg1[%8, %c0_2] : memref<128x1xf32, #tpu.memory_space<vmem>>, vector<128x1xf32>
    %10 = vector.broadcast %9 : vector<128x1xf32> to vector<128x128xf32>
    %11 = arith.mulf %7, %10 : vector<128x128xf32>
    %12 = arith.index_cast %1 : i32 to index
    %c0_3 = arith.constant 0 : index
    %13 = vector.load %arg2[%12, %c0_3] : memref<128x128xbf16, #tpu.memory_space<vmem>>, vector<128x128xbf16>
    %14 = arith.truncf %11 : vector<128x128xf32> to vector<128x128xbf16>
    %15 = tpu.concatenate %13, %14 in 1 : vector<128x128xbf16>, vector<128x128xbf16> -> vector<128x256xbf16>
    %c0_4 = arith.constant 0 : index
    %c0_5 = arith.constant 0 : index
    %16 = vector.load %arg3[%c0_4, %c0_5] : memref<256x128xbf16, #tpu.memory_space<vmem>>, vector<256x128xbf16>
    %cst_6 = arith.constant dense<0.000000e+00> : vector<128x128xf32>
    %17 = tpu.matmul %15, %16, %cst_6 {dimension_numbers = #tpu.dot_dimension_numbers<[1], [0], [0], [1], [0, 0, 1, 1], [], []>} : vector<128x256xbf16>, vector<256x128xbf16>, vector<128x128xf32> -> vector<128x128xf32>
    %c0_7 = arith.constant 0 : index
    %c0_8 = arith.constant 0 : index
    %18 = vector.load %arg4[%c0_7, %c0_8] : memref<1x128xf32, #tpu.memory_space<vmem>>, vector<1x128xf32>
    %19 = vector.broadcast %18 : vector<1x128xf32> to vector<128x128xf32>
    %20 = arith.addf %17, %19 : vector<128x128xf32>
    %cst_9 = arith.constant 0.000000e+00 : f32
    %21 = vector.broadcast %cst_9 : f32 to vector<128x128xf32>
    %22 = arith.maximumf %20, %21 : vector<128x128xf32>
    %23 = arith.truncf %22 : vector<128x128xf32> to vector<128x128xbf16>
    %24 = arith.index_cast %1 : i32 to index
    %c0_10 = arith.constant 0 : index
    %25 = vector.load %arg10[%24, %c0_10] : memref<128x128xbf16, #tpu.memory_space<vmem>>, vector<128x128xbf16>
    tpu.vector_store %arg10[%24, %c0_10], %23 {strides = array<i32>} : memref<128x128xbf16, #tpu.memory_space<vmem>>, vector<128x128xbf16>,
    %c1_i32 = arith.constant 1 : i32
    %c0_i32_11 = arith.constant 0 : i32
    %c128_i32_12 = arith.constant 128 : i32
    %26 = arith.muli %c0_i32_11, %c128_i32_12 : i32
    %27 = tpu.assume_multiple %26, 128 : i32
    %28 = arith.index_cast %27 : i32 to index
    %c0_13 = arith.constant 0 : index
    %29 = vector.load %arg0[%28, %c0_13] : memref<128x128xi8, #tpu.memory_space<vmem>>, vector<128x128xi8>
    %30 = arith.sitofp %29 : vector<128x128xi8> to vector<128x128xf32>
    %31 = arith.truncf %30 : vector<128x128xf32> to vector<128x128xbf16>
    %c0_14 = arith.constant 0 : index
    %c0_15 = arith.constant 0 : index
    %32 = vector.load %arg10[%c0_14, %c0_15] : memref<128x128xbf16, #tpu.memory_space<vmem>>, vector<128x128xbf16>
    %cst_16 = arith.constant dense<0.000000e+00> : vector<128x128xf32>
    %33 = tpu.matmul %31, %32, %cst_16 {dimension_numbers = #tpu.dot_dimension_numbers<[1], [0], [0], [1], [0, 0, 1, 1], [], []>} : vector<128x128xbf16>, vector<128x128xbf16>, vector<128x128xf32> -> vector<128x128xf32>
    %34 = arith.index_cast %27 : i32 to index
    %c0_17 = arith.constant 0 : index
    %35 = vector.load %arg1[%34, %c0_17] : memref<128x1xf32, #tpu.memory_space<vmem>>, vector<128x1xf32>
    %36 = vector.broadcast %35 : vector<128x1xf32> to vector<128x128xf32>
    %37 = arith.mulf %33, %36 : vector<128x128xf32>
    %38 = arith.index_cast %27 : i32 to index
    %c0_18 = arith.constant 0 : index
    %39 = vector.load %arg10[%38, %c0_18] : memref<128x128xbf16, #tpu.memory_space<vmem>>, vector<128x128xbf16>
    %40 = arith.truncf %37 : vector<128x128xf32> to vector<128x128xbf16>
    %41 = tpu.concatenate %39, %40 in 1 : vector<128x128xbf16>, vector<128x128xbf16> -> vector<128x256xbf16>
    %c0_19 = arith.constant 0 : index
    %c0_20 = arith.constant 0 : index
    %42 = vector.load %arg5[%c0_19, %c0_20] : memref<256x128xbf16, #tpu.memory_space<vmem>>, vector<256x128xbf16>
    %cst_21 = arith.constant dense<0.000000e+00> : vector<128x128xf32>
    %43 = tpu.matmul %41, %42, %cst_21 {dimension_numbers = #tpu.dot_dimension_numbers<[1], [0], [0], [1], [0, 0, 1, 1], [], []>} : vector<128x256xbf16>, vector<256x128xbf16>, vector<128x128xf32> -> vector<128x128xf32>
    %c0_22 = arith.constant 0 : index
    %c0_23 = arith.constant 0 : index
    %44 = vector.load %arg6[%c0_22, %c0_23] : memref<1x128xf32, #tpu.memory_space<vmem>>, vector<1x128xf32>
    %45 = vector.broadcast %44 : vector<1x128xf32> to vector<128x128xf32>
    %46 = arith.addf %43, %45 : vector<128x128xf32>
    %cst_24 = arith.constant 0.000000e+00 : f32
    %47 = vector.broadcast %cst_24 : f32 to vector<128x128xf32>
    %48 = arith.maximumf %46, %47 : vector<128x128xf32>
    %49 = arith.truncf %48 : vector<128x128xf32> to vector<128x128xbf16>
    %c0_25 = arith.constant 0 : index
    %c0_26 = arith.constant 0 : index
    %50 = vector.load %arg7[%c0_25, %c0_26] : memref<128x128xbf16, #tpu.memory_space<vmem>>, vector<128x128xbf16>
    %cst_27 = arith.constant dense<0.000000e+00> : vector<128x128xf32>
    %51 = tpu.matmul %49, %50, %cst_27 {dimension_numbers = #tpu.dot_dimension_numbers<[1], [0], [0], [1], [0, 0, 1, 1], [], []>} : vector<128x128xbf16>, vector<128x128xbf16>, vector<128x128xf32> -> vector<128x128xf32>
    %c0_28 = arith.constant 0 : index
    %c0_29 = arith.constant 0 : index
    %52 = vector.load %arg8[%c0_28, %c0_29] : memref<1x128xf32, #tpu.memory_space<vmem>>, vector<1x128xf32>
    %53 = vector.broadcast %52 : vector<1x128xf32> to vector<128x128xf32>
    %54 = arith.addf %51, %53 : vector<128x128xf32>
    %55 = arith.index_cast %27 : i32 to index
    %c0_30 = arith.constant 0 : index
    %56 = vector.load %arg9[%55, %c0_30] : memref<128x128xf32, #tpu.memory_space<vmem>>, vector<128x128xf32>
    tpu.vector_store %arg9[%55, %c0_30], %54 {strides = array<i32>} : memref<128x128xf32, #tpu.memory_space<vmem>>, vector<128x128xf32>,
    %c1_i32_31 = arith.constant 1 : i32
    return
  }
}

</mosaic_0001>

<bundles_post_ra>
// kernel: tpu_custom_call.1
= control target key start
LH: loop header
LB: loop body
LE: loop exit
PB: predicated region body
PF: predicated region fallthrough
CT: control target
= control target key end

     0   :  { %14 = vsyncpa [#allocation4], 0  ;;  %s2443_s0 = inlined_call_operand.hbm [shape: s8[128,128], index: 0, kind: input, shape index: {}]   ;;  %s2444_s1 = inlined_call_operand.hbm [shape: f32[128,1], index: 1, kind: input, shape index: {}]   ;;  %s2445_s2 = inlined_call_operand.hbm [shape: bf16[128,128], index: 2, kind: input, shape index: {}]   ;;  %s2446_s3 = inlined_call_operand.hbm [shape: bf16[256,128], index: 3, kind: input, shape index: {}]   ;;  %s2447_s4 = inlined_call_operand.hbm [shape: f32[1,128], index: 4, kind: input, shape index: {}]   ;;  %s2448_s5 = inlined_call_operand.hbm [shape: bf16[256,128], index: 5, kind: input, shape index: {}]   ;;  %s2449_s6 = inlined_call_operand.hbm [shape: f32[1,128], index: 6, kind: input, shape index: {}]   ;;  %s2450_s7 = inlined_call_operand.hbm [shape: bf16[128,128], index: 7, kind: input, shape index: {}]   ;;  %s2451_s8 = inlined_call_operand.hbm [shape: f32[1,128], index: 8, kind: input, shape index: {}]   ;;  %s2452_s9 = inlined_call_operand.hbm [shape: f32[128,128], index: 9, kind: output, shape index: {}]  }
   0x1   :  { %15 = vsyncpa [#allocation7], 0 }
   0x2   :  { %16 = vsyncpa [#allocation10], 0 }
   0x3   :  { %17 = vsyncpa [#allocation13], 0 }
   0x4   :  { %18 = vsyncpa [#allocation16], 0 }
   0x5   :  { %19 = vsyncpa [#allocation5], 0  ;;  %s2113_s30 = smov [#allocation6]   ;;  %s1881_s13 = scalar_lea.hbm %s2444_s1, 2048 }
   0x6   :  { %s37_s10 = sshll.u32 %s2113_s30, 4  ;;  %p1882_p0 = scmp.ne.s32.totalorder %s2444_s1, %s1881_s13  ;;  %s38_s10 = int_to_ptr.vmem [resolvable:$true] %s37_s10 }
   0x7   :  { %p1885_p1 = scmp.lt.u32.totalorder %s1881_s13, %s2444_s1 }
   0x9   :  { %p1887_p2 = pnand %p1885_p1, %p1882_p0 }
   0xb   :  { %1890 = shalt.err (!%p1887_p2)
}
   0xc   :  { %s1891_s18 = scalar_lea.vmem %s38_s10, 2048  ;;  %p1896_p4 = scmp.lt.s32.totalorder %s38_s10, %s38_s10 }
   0xd   :  { %p1892_p3 = scmp.ne.s32.totalorder %s38_s10, %s1891_s18  ;;  %p1897_p5 = scmp.lt.s32.totalorder %s1891_s18, %s1891_s18 }
   0xf   :  { %p1898_p6 = por %p1897_p5, %p1896_p4 }
  0x11   :  { %p1899_p7 = pnand %p1898_p6, %p1892_p3 }
  0x13   :  { %1902 = shalt.err (!%p1899_p7)
}
  0x14   :  { %s2114_s19 = smov 128   ;;  %s2115_s20 = smov 8  }
  0x15   :  { %43 = dma.hbm_to_vmem [thread:$0]  %s2444_s1, 2048, %s38_s10, [#allocation7], %s2114_s19, %s2114_s19, %s2115_s20  }
  0x16   :  { %s2116_s23 = smov [#allocation9]   ;;  %s2117_s25 = smov [#allocation12]  }
  0x17   :  { %s61_s24 = sshll.u32 %s2116_s23, 4  ;;  %s83_s26 = sshll.u32 %s2117_s25, 4  ;;  %s62_s24 = int_to_ptr.vmem [resolvable:$true] %s61_s24  ;;  %s84_s26 = int_to_ptr.vmem [resolvable:$true] %s83_s26 }
  0x18   :  { %s1903_s29 = scalar_lea.hbm %s2446_s3, 2048 }
  0x19   :  { %p1904_p8 = scmp.ne.s32.totalorder %s2446_s3, %s1903_s29  ;;  %p1907_p9 = scmp.lt.u32.totalorder %s1903_s29, %s2446_s3 }
  0x1b   :  { %p1909_p10 = pnand %p1907_p9, %p1904_p8 }
  0x1d   :  { %1912 = shalt.err (!%p1909_p10)
}
  0x1e   :  { %s1913_s1 = scalar_lea.vmem %s62_s24, 2048  ;;  %p1918_p12 = scmp.lt.s32.totalorder %s62_s24, %s62_s24 }
  0x1f   :  { %p1914_p11 = scmp.ne.s32.totalorder %s62_s24, %s1913_s1  ;;  %p1919_p13 = scmp.lt.s32.totalorder %s1913_s1, %s1913_s1 }
  0x21   :  { %p1920_p0 = por %p1919_p13, %p1918_p12 }
  0x23   :  { %p1921_p1 = pnand %p1920_p0, %p1914_p11 }
  0x25   :  { %1924 = shalt.err (!%p1921_p1)
}
  0x26   :  { %s2118_s10 = smov 64   ;;  %s2119_s14 = smov 4  }
  0x27   :  { %67 = dma.hbm_to_vmem [thread:$0]  %s2446_s3, 2048, %s62_s24, [#allocation10], %s2118_s10, %s2118_s10, %s2119_s14  }
  0x28   :  { %s1925_s21 = scalar_lea.hbm %s2448_s5, 2048 }
  0x29   :  { %p1926_p2 = scmp.ne.s32.totalorder %s2448_s5, %s1925_s21  ;;  %p1929_p3 = scmp.lt.u32.totalorder %s1925_s21, %s2448_s5 }
  0x2b   :  { %p1931_p4 = pnand %p1929_p3, %p1926_p2 }
  0x2d   :  { %1934 = shalt.err (!%p1931_p4)
}
  0x2e   :  { %s1935_s28 = scalar_lea.vmem %s84_s26, 2048  ;;  %p1940_p6 = scmp.lt.s32.totalorder %s84_s26, %s84_s26 }
  0x2f   :  { %p1936_p5 = scmp.ne.s32.totalorder %s84_s26, %s1935_s28  ;;  %p1941_p7 = scmp.lt.s32.totalorder %s1935_s28, %s1935_s28 }
  0x31   :  { %p1942_p8 = por %p1941_p7, %p1940_p6 }
  0x33   :  { %p1943_p9 = pnand %p1942_p8, %p1936_p5 }
  0x35   :  { %1946 = shalt.err (!%p1943_p9)
}
  0x36   :  { %89 = dma.hbm_to_vmem [thread:$0]  %s2448_s5, 2048, %s84_s26, [#allocation13], %s2118_s10, %s2118_s10, %s2119_s14  }
  0x37   :  { %s2120_s29 = smov [#allocation15]   ;;  %s2121_s11 = smov [#allocation3]  }
  0x38   :  { %s105_s30 = sshll.u32 %s2120_s29, 4  ;;  %s25_s12 = sshll.u32 %s2121_s11, 4  ;;  %s106_s30 = int_to_ptr.vmem [resolvable:$true] %s105_s30  ;;  %s26_s12 = int_to_ptr.vmem [resolvable:$true] %s25_s12 }
  0x39   :  { %s1947_s15 = scalar_lea.hbm %s2450_s7, 1024 }
  0x3a   :  { %p1948_p10 = scmp.ne.s32.totalorder %s2450_s7, %s1947_s15  ;;  %p1951_p11 = scmp.lt.u32.totalorder %s1947_s15, %s2450_s7 }
  0x3c   :  { %p1953_p12 = pnand %p1951_p11, %p1948_p10 }
  0x3e   :  { %1956 = shalt.err (!%p1953_p12)
}
  0x3f   :  { %s1957_s5 = scalar_lea.vmem %s106_s30, 1024  ;;  %p1962_p0 = scmp.lt.s32.totalorder %s106_s30, %s106_s30 }
  0x40   :  { %p1958_p13 = scmp.ne.s32.totalorder %s106_s30, %s1957_s5  ;;  %p1963_p1 = scmp.lt.s32.totalorder %s1957_s5, %s1957_s5 }
  0x42   :  { %p1964_p2 = por %p1963_p1, %p1962_p0 }
  0x44   :  { %p1965_p3 = pnand %p1964_p2, %p1958_p13 }
  0x46   :  { %1968 = shalt.err (!%p1965_p3)
}
  0x47   :  { %111 = dma.hbm_to_vmem [thread:$0]  %s2450_s7, 1024, %s106_s30, [#allocation16], %s2118_s10, %s2118_s10, %s2119_s14  }
  0x48   :  { %s1969_s27 = scalar_lea.hbm %s2443_s0, 512 }
  0x49   :  { %p1970_p4 = scmp.ne.s32.totalorder %s2443_s0, %s1969_s27  ;;  %p1973_p5 = scmp.lt.u32.totalorder %s1969_s27, %s2443_s0 }
  0x4b   :  { %p1975_p6 = pnand %p1973_p5, %p1970_p4 }
  0x4d   :  { %1978 = shalt.err (!%p1975_p6)
}
  0x4e   :  { %s1979_s11 = scalar_lea.vmem %s26_s12, 512  ;;  %p1984_p8 = scmp.lt.s32.totalorder %s26_s12, %s26_s12 }
  0x4f   :  { %p1980_p7 = scmp.ne.s32.totalorder %s26_s12, %s1979_s11  ;;  %p1985_p9 = scmp.lt.s32.totalorder %s1979_s11, %s1979_s11 }
  0x51   :  { %p1986_p10 = por %p1985_p9, %p1984_p8 }
  0x53   :  { %p1987_p11 = pnand %p1986_p10, %p1980_p7 }
  0x55   :  { %1990 = shalt.err (!%p1987_p11)
}
  0x56   :  { %31 = dma.hbm_to_vmem [thread:$0]  %s2443_s0, 512, %s26_s12, [#allocation4], %s2114_s19, %s2114_s19, %s2115_s20  }
  0x57   :  { %s2122_s13 = smov [#allocation8]   ;;  %s2123_s15 = smov [#allocation11]  }
  0x58   :  { %s49_s1 = sshll.u32 %s2122_s13, 4  ;;  %s74_s16 = sshll.u32 %s2123_s15, 4  ;;  %s50_s1 = int_to_ptr.vmem [resolvable:$true] %s49_s1  ;;  %s75_s16 = int_to_ptr.vmem [resolvable:$true] %s74_s16 }
  0x59   :  { %s1991_s21 = scalar_lea.hbm %s2445_s2, 1024 }
  0x5a   :  { %p1992_p12 = scmp.ne.s32.totalorder %s2445_s2, %s1991_s21  ;;  %p1995_p13 = scmp.lt.u32.totalorder %s1991_s21, %s2445_s2 }
  0x5c   :  { %p1997_p0 = pnand %p1995_p13, %p1992_p12 }
  0x5e   :  { %2000 = shalt.err (!%p1997_p0)
}
  0x5f   :  { %s2001_s0 = scalar_lea.vmem %s50_s1, 1024  ;;  %p2006_p2 = scmp.lt.s32.totalorder %s50_s1, %s50_s1 }
  0x60   :  { %p2002_p1 = scmp.ne.s32.totalorder %s50_s1, %s2001_s0  ;;  %p2007_p3 = scmp.lt.s32.totalorder %s2001_s0, %s2001_s0 }
  0x62   :  { %p2008_p4 = por %p2007_p3, %p2006_p2 }
  0x64   :  { %p2009_p5 = pnand %p2008_p4, %p2002_p1 }
  0x66   :  { %2012 = shalt.err (!%p2009_p5)
}
  0x67   :  { %55 = dma.hbm_to_vmem [thread:$0]  %s2445_s2, 1024, %s50_s1, [#allocation7], %s2118_s10, %s2118_s10, %s2119_s14  }
  0x68   :  { %s2013_s3 = scalar_lea.hbm %s2447_s4, 16 }
  0x69   :  { %p2014_p6 = scmp.ne.s32.totalorder %s2447_s4, %s2013_s3  ;;  %p2017_p7 = scmp.lt.u32.totalorder %s2013_s3, %s2447_s4 }
  0x6b   :  { %p2019_p8 = pnand %p2017_p7, %p2014_p6 }
  0x6d   :  { %2022 = shalt.err (!%p2019_p8)
}
  0x6e   :  { %s2023_s30 = scalar_lea.vmem %s75_s16, 16  ;;  %s2027_s13 = scalar_lea.vmem %s75_s16, 32 }
  0x6f   :  { %p2024_p9 = scmp.ne.s32.totalorder %s75_s16, %s2023_s30  ;;  %p2028_p10 = scmp.lt.s32.totalorder %s75_s16, %s75_s16 }
  0x70   :  { %p2029_p11 = scmp.lt.s32.totalorder %s2027_s13, %s2023_s30 }
  0x72   :  { %p2030_p12 = por %p2029_p11, %p2028_p10 }
  0x74   :  { %p2031_p13 = pnand %p2030_p12, %p2024_p9 }
  0x76   :  { %2034 = shalt.err (!%p2031_p13)
}
  0x77   :  { %77 = dma.hbm_to_vmem [thread:$0]  %s2447_s4, 16, %s75_s16, [#allocation10]  }
  0x78   :  { %s2124_s14 = smov [#allocation14]   ;;  %s2125_s15 = smov [#allocation17]  }
  0x79   :  { %s96_s1 = sshll.u32 %s2124_s14, 4  ;;  %s118_s17 = sshll.u32 %s2125_s15, 4  ;;  %s97_s1 = int_to_ptr.vmem [resolvable:$true] %s96_s1  ;;  %s119_s17 = int_to_ptr.vmem [resolvable:$true] %s118_s17 }
  0x7a   :  { %s2035_s5 = scalar_lea.hbm %s2449_s6, 16 }
  0x7b   :  { %p2036_p0 = scmp.ne.s32.totalorder %s2449_s6, %s2035_s5  ;;  %p2039_p1 = scmp.lt.u32.totalorder %s2035_s5, %s2449_s6 }
  0x7d   :  { %p2041_p2 = pnand %p2039_p1, %p2036_p0 }
  0x7f   :  { %2044 = shalt.err (!%p2041_p2)
}
  0x80   :  { %s2045_s4 = scalar_lea.vmem %s97_s1, 16  ;;  %s2049_s16 = scalar_lea.vmem %s97_s1, 32 }
  0x81   :  { %p2046_p3 = scmp.ne.s32.totalorder %s97_s1, %s2045_s4  ;;  %p2050_p4 = scmp.lt.s32.totalorder %s97_s1, %s97_s1 }
  0x82   :  { %p2051_p5 = scmp.lt.s32.totalorder %s2049_s16, %s2045_s4 }
  0x84   :  { %p2052_p6 = por %p2051_p5, %p2050_p4 }
  0x86   :  { %p2053_p7 = pnand %p2052_p6, %p2046_p3 }
  0x88   :  { %2056 = shalt.err (!%p2053_p7)
}
  0x89   :  { %99 = dma.hbm_to_vmem [thread:$0]  %s2449_s6, 16, %s97_s1, [#allocation13]  }
  0x8a   :  { %s2057_s3 = scalar_lea.hbm %s2451_s8, 16 }
  0x8b   :  { %p2058_p8 = scmp.ne.s32.totalorder %s2451_s8, %s2057_s3  ;;  %p2061_p9 = scmp.lt.u32.totalorder %s2057_s3, %s2451_s8 }
  0x8d   :  { %p2063_p10 = pnand %p2061_p9, %p2058_p8 }
  0x8f   :  { %2066 = shalt.err (!%p2063_p10)
}
  0x90   :  { %s2067_s30 = scalar_lea.vmem %s119_s17, 16  ;;  %s2071_s13 = scalar_lea.vmem %s119_s17, 32 }
  0x91   :  { %p2068_p11 = scmp.ne.s32.totalorder %s119_s17, %s2067_s30  ;;  %p2072_p12 = scmp.lt.s32.totalorder %s119_s17, %s119_s17 }
  0x92   :  { %p2073_p13 = scmp.lt.s32.totalorder %s2071_s13, %s2067_s30 }
  0x94   :  { %p2074_p0 = por %p2073_p13, %p2072_p12 }
  0x96   :  { %p2075_p1 = pnand %p2074_p0, %p2068_p11 }
  0x98   :  { %2078 = shalt.err (!%p2075_p1)
}
  0x99   :  { %121 = dma.hbm_to_vmem [thread:$0]  %s2451_s8, 16, %s119_s17, [#allocation16]  }
  0x9a   :  { %2101 = dma.done.wait [#allocation4], 512  }
  0x9b   :  { %2102 = vsyncadd [#allocation4], 4294966784 }
  0x9c   :  { %2103 = dma.done.wait [#allocation7], 3072  }
  0x9d   :  { %2104 = vsyncadd [#allocation7], 4294964224 }
  0x9e   :  { %2105 = dma.done.wait [#allocation10], 2064  }
  0x9f   :  { %2106 = vsyncadd [#allocation10], 4294965232 }
  0xa0   :  { %2107 = dma.done.wait [#allocation13], 2064  }
  0xa1   :  { %2108 = vsyncadd [#allocation13], 4294965232 }
  0xa2   :  { %2109 = dma.done.wait [#allocation16], 1040  }
  0xa3   :  { %2110 = vsyncadd [#allocation16], 4294966256  ;;  %v2126_v0 = vmov 0   ;;  %v1825_v1 = vld [vmem:[#allocation8] sm:$0xff]   ;;  %v1826_v2 = vld [vmem:[#allocation8 + $0x8] sm:$0xff]   ;;  %s2127_s8 = smov [#allocation18]  }
  0xa4   :  { %1823 = vset.pattern.permute.xlu0 %v2126_v0  ;;  %1824 = vset.pattern.permute.xlu1 %v2126_v0  ;;  %v1827_v3 = vld [vmem:[#allocation8 + $0x10] sm:$0xff]   ;;  %v1828_v4 = vld [vmem:[#allocation8 + $0x18] sm:$0xff]   ;;  %v2304_v5 = vld [vmem:[#allocation3] sm:$0xff]  ;;  %s1461_s10 = sshll.u32 %s2127_s8, 4  ;;  %s1462_s10 = int_to_ptr.vmem [resolvable:$true] %s1461_s10 }
  0xa5   :  { %1712 = vmatprep.subr.bf16.mxu0 %v1825_v1  ;;  %v154_v6 = vunpack.c.l.s8.bf16 %v2304_v5  ;;  %v323_v7 = vld [vmem:[#allocation6] sm:$0xff]  ;;  %v325_v8 = vld [vmem:[#allocation6 + $0x10] sm:$0xff]  ;;  %v324_v9 = vld [vmem:[#allocation6 + $0x8] sm:$0xff]  ;;  %v155_v25 = vunpack.c.h.s8.bf16 %v2304_v5  ;;  %s2079_s14 = scalar_lea.vmem %s1462_s10, 2048  ;;  %p2084_p3 = scmp.lt.s32.totalorder %s1462_s10, %s1462_s10 }
  0xa6   :  { %1713 = vmatpush3.bf16.msra.mxu0 %v1825_v1  ;;  %341 = vperm.xlu0 %1823, %v323_v7   ;;  %v1829_v10 = vld [vmem:[#allocation8 + $0x20] sm:$0xff]   ;;  %v326_v11 = vld [vmem:[#allocation6 + $0x18] sm:$0xff]  ;;  %v1830_v12 = vld [vmem:[#allocation8 + $0x28] sm:$0xff]   ;;  %p2080_p2 = scmp.ne.s32.totalorder %s1462_s10, %s2079_s14  ;;  %p2085_p4 = scmp.lt.s32.totalorder %s2079_s14, %s2079_s14 }
  0xa7   :  { %1714 = vmatprep.subr.bf16.mxu0 %v1826_v2  ;;  %1728 = vmatprep.mubr.bf16.mxu0 %v154_v6  ;;  %v327_v13 = vld [vmem:[#allocation6 + $0x20] sm:$0xff]  ;;  %v328_v14 = vld [vmem:[#allocation6 + $0x28] sm:$0xff]  ;;  %v329_v15 = vld [vmem:[#allocation6 + $0x30] sm:$0xff] }
  0xa8   :  { %351 = vperm.xlu1 %1824, %v325_v8   ;;  %v1831_v16 = vld [vmem:[#allocation8 + $0x30] sm:$0xff]   ;;  %v330_v17 = vld [vmem:[#allocation6 + $0x38] sm:$0xff]  ;;  %v331_v18 = vld [vmem:[#allocation6 + $0x40] sm:$0xff]  ;;  %p2086_p5 = por %p2085_p4, %p2084_p3 }
  0xa9   :  { %v1832_v19 = vld [vmem:[#allocation8 + $0x38] sm:$0xff]   ;;  %v332_v20 = vld [vmem:[#allocation6 + $0x48] sm:$0xff]  ;;  %v333_v21 = vld [vmem:[#allocation6 + $0x50] sm:$0xff] }
  0xaa   :  { %1715 = vmatpush3.bf16.msra.mxu0 %v1826_v2  ;;  %346 = vperm.xlu0 %1823, %v324_v9   ;;  %v2309_v22 = vld [vmem:[#allocation3 + $0x8] sm:$0xff]  ;;  %v334_v23 = vld [vmem:[#allocation6 + $0x58] sm:$0xff]  ;;  %v335_v24 = vld [vmem:[#allocation6 + $0x60] sm:$0xff]  ;;  %p2087_p6 = pnand %p2086_p5, %p2080_p2 }
  0xab   :  { %1716 = vmatprep.subr.bf16.mxu0 %v1827_v3  ;;  %v156_v26 = vunpack.c.l.s8.bf16 %v2309_v22  ;;  %v336_v27 = vld [vmem:[#allocation6 + $0x68] sm:$0xff]  ;;  %v337_v28 = vld [vmem:[#allocation6 + $0x70] sm:$0xff]  ;;  %v338_v30 = vld [vmem:[#allocation6 + $0x78] sm:$0xff]  ;;  %v157_v31 = vunpack.c.h.s8.bf16 %v2309_v22 }
  0xac   :  { %356 = vperm.xlu1 %1824, %v326_v11   ;;  %v2315_v29 = vld [vmem:[#allocation3 + $0x10] sm:$0xff]  ;;  %v2323_v33 = vld [vmem:[#allocation3 + $0x18] sm:$0xff]  ;;  %v1833_v34 = vld [vmem:[#allocation9 + $0x40] sm:$0xff]  }
  0xad   :  { %v158_v32 = vunpack.c.l.s8.bf16 %v2315_v29  ;;  %v1834_v35 = vld [vmem:[#allocation9] sm:$0xff]   ;;  %v159_v36 = vunpack.c.h.s8.bf16 %v2315_v29  ;;  %v160_v37 = vunpack.c.l.s8.bf16 %v2323_v33  ;;  %1552 = vmatprep.subr.bf16.mxu1 %v1833_v34  ;;  %v1835_v38 = vld [vmem:[#allocation9 + $0x48] sm:$0xff]   ;;  %v1837_v40 = vld [vmem:[#allocation9 + $0x50] sm:$0xff]   ;;  %v161_v42 = vunpack.c.h.s8.bf16 %v2323_v33 }
  0xae   :  { %1717 = vmatpush3.bf16.msra.mxu0 %v1827_v3  ;;  %361 = vperm.xlu0 %1823, %v327_v13   ;;  %v1836_v39 = vld [vmem:[#allocation9 + $0x8] sm:$0xff]   ;;  %v1838_v41 = vld [vmem:[#allocation9 + $0x10] sm:$0xff]   ;;  %v1839_v43 = vld [vmem:[#allocation9 + $0x58] sm:$0xff]  }
  0xaf   :  { %1718 = vmatprep.subr.bf16.mxu0 %v1828_v4  ;;  %1553 = vmatpush3.bf16.msra.mxu1 %v1834_v35  ;;  %v1840_v44 = vld [vmem:[#allocation9 + $0x18] sm:$0xff]   ;;  %v1841_v45 = vld [vmem:[#allocation9 + $0x60] sm:$0xff]   ;;  %v1843_v47 = vld [vmem:[#allocation9 + $0x68] sm:$0xff]  }
  0xb0   :  { %366 = vperm.xlu1 %1824, %v328_v14   ;;  %1554 = vmatprep.subr.bf16.mxu1 %v1835_v38  ;;  %v1842_v46 = vld [vmem:[#allocation9 + $0x20] sm:$0xff]   ;;  %v1844_v48 = vld [vmem:[#allocation9 + $0x28] sm:$0xff]   ;;  %v1845_v49 = vld [vmem:[#allocation9 + $0x70] sm:$0xff]  }
  0xb1   :  { %v1846_v50 = vld [vmem:[#allocation9 + $0x30] sm:$0xff]   ;;  %v1847_v51 = vld [vmem:[#allocation9 + $0x78] sm:$0xff]   ;;  %v1873_v29 = vld [vmem:[#allocation15] sm:$0xff]  }
  0xb2   :  { %1719 = vmatpush3.bf16.msra.mxu0 %v1828_v4  ;;  %371 = vperm.xlu0 %1823, %v329_v15   ;;  %v1848_v52 = vld [vmem:[#allocation9 + $0x38] sm:$0xff]   ;;  %v1868_v22 = vld [vmem:[#allocation12 + $0x28] sm:$0xff]  }
  0xb3   :  { %1720 = vmatprep.subr.bf16.mxu0 %v1829_v10  ;;  %1555 = vmatpush3.bf16.msra.mxu1 %v1836_v39  ;;  %v1864_v5 = vld [vmem:[#allocation12 + $0x18] sm:$0xff]  }
  0xb4   :  { %376 = vperm.xlu1 %1824, %v330_v17   ;;  %1556 = vmatprep.subr.bf16.mxu1 %v1837_v40 }
  0xb6   :  { %1721 = vmatpush3.bf16.msra.mxu0 %v1829_v10  ;;  %381 = vperm.xlu0 %1823, %v331_v18  }
  0xb7   :  { %1722 = vmatprep.subr.bf16.mxu0 %v1830_v12  ;;  %1557 = vmatpush3.bf16.msra.mxu1 %v1838_v41 }
  0xb8   :  { %386 = vperm.xlu1 %1824, %v332_v20   ;;  %1558 = vmatprep.subr.bf16.mxu1 %v1839_v43 }
  0xba   :  { %1723 = vmatpush3.bf16.msra.mxu0 %v1830_v12  ;;  %391 = vperm.xlu0 %1823, %v333_v21  }
  0xbb   :  { %1724 = vmatprep.subr.bf16.mxu0 %v1831_v16  ;;  %1559 = vmatpush3.bf16.msra.mxu1 %v1840_v44 }
  0xbc   :  { %396 = vperm.xlu1 %1824, %v334_v23   ;;  %1560 = vmatprep.subr.bf16.mxu1 %v1841_v45  ;;  %v1851_v45 = vld [vmem:[#allocation8 + $0x10] sm:$0xff]  }
  0xbe   :  { %1725 = vmatpush3.bf16.msra.mxu0 %v1831_v16  ;;  %401 = vperm.xlu0 %1823, %v335_v24  }
  0xbf   :  { %1726 = vmatprep.subr.bf16.mxu0 %v1832_v19  ;;  %1561 = vmatpush3.bf16.msra.mxu1 %v1842_v46 }
  0xc0   :  { %406 = vperm.xlu1 %1824, %v336_v27   ;;  %1562 = vmatprep.subr.bf16.mxu1 %v1843_v47 }
  0xc2   :  { %1727 = vmatpush3.bf16.msra.mxu0 %v1832_v19  ;;  %411 = vperm.xlu0 %1823, %v337_v28  }
  0xc3   :  { %1563 = vmatpush3.bf16.msra.mxu1 %v1844_v48 }
  0xc4   :  { %416 = vperm.xlu1 %1824, %v338_v30   ;;  %1564 = vmatprep.subr.bf16.mxu1 %v1845_v49 }
  0xc5   :  { %1729 = vmatmul.mubr.bf16.vlgmr.msra.gmra.mrb[0].mxu0 %v155_v25 }
  0xc6   :  { %1732 = vmatprep.mubr.bf16.mxu0 %v156_v26  ;;  %906 = vperm.xlu0 %1823, %v323_v7   ;;  %v1849_v7 = vld [vmem:[#allocation8] sm:$0xff]  }
  0xc7   :  { %1565 = vmatpush3.bf16.msra.mxu1 %v1846_v50 }
  0xc8   :  { %911 = vperm.xlu1 %1824, %v324_v9   ;;  %1566 = vmatprep.subr.bf16.mxu1 %v1847_v51 }
  0xca   :  { %916 = vperm.xlu0 %1823, %v325_v8  }
  0xcb   :  { %1567 = vmatpush3.bf16.msra.mxu1 %v1848_v52 }
  0xcc   :  { %921 = vperm.xlu1 %1824, %v326_v11   ;;  %1776 = vmatprep.subr.bf16.mxu1 %v1873_v29 }
  0xcd   :  { %1733 = vmatmul.mubr.bf16.gmra.mrb[4].mxu0 %v157_v31 }
  0xce   :  { %1736 = vmatprep.mubr.bf16.mxu0 %v158_v32  ;;  %926 = vperm.xlu0 %1823, %v327_v13  }
  0xd0   :  { %931 = vperm.xlu1 %1824, %v328_v14  }
  0xd2   :  { %936 = vperm.xlu0 %1823, %v329_v15  }
  0xd4   :  { %941 = vperm.xlu1 %1824, %v330_v17  }
  0xd5   :  { %1737 = vmatmul.mubr.bf16.gmra.mrb[8].mxu0 %v159_v36 }
  0xd6   :  { %1740 = vmatprep.mubr.bf16.mxu0 %v160_v37  ;;  %946 = vperm.xlu0 %1823, %v331_v18  }
  0xd8   :  { %951 = vperm.xlu1 %1824, %v332_v20  }
  0xda   :  { %956 = vperm.xlu0 %1823, %v333_v21   ;;  %v1850_v21 = vld [vmem:[#allocation8 + $0x8] sm:$0xff]  }
  0xdc   :  { %961 = vperm.xlu1 %1824, %v334_v23  }
  0xdd   :  { %1741 = vmatmul.mubr.bf16.gmra.mrb[12].mxu0 %v161_v42 }
  0xde   :  { %1760 = vmatprep.mubr.bf16.mxu0 %v154_v6  ;;  %966 = vperm.xlu0 %1823, %v335_v24  }
  0xe0   :  { %971 = vperm.xlu1 %1824, %v336_v27  }
  0xe2   :  { %976 = vperm.xlu0 %1823, %v337_v28  }
  0xe4   :  { %981 = vperm.xlu1 %1824, %v338_v30  }
 0x125   :  { %v342_v53 = vpop.permute.xlu0 %341 }
 0x127   :  { %v352_v54 = vpop.permute.xlu1 %351 }
 0x129   :  { %v347_v55 = vpop.permute.xlu0 %346 }
 0x12b   :  { %v357_v56 = vpop.permute.xlu1 %356 }
 0x12d   :  { %v362_v57 = vpop.permute.xlu0 %361 }
 0x12f   :  { %v367_v58 = vpop.permute.xlu1 %366 }
 0x131   :  { %v372_v60 = vpop.permute.xlu0 %371 }
 0x133   :  { %v377_v62 = vpop.permute.xlu1 %376 }
 0x135   :  { %v382_v9 = vpop.permute.xlu0 %381 }
 0x137   :  { %v387_v10 = vpop.permute.xlu1 %386 }
 0x139   :  { %v392_v19 = vpop.permute.xlu0 %391 }
 0x13b   :  { %v397_v23 = vpop.permute.xlu1 %396 }
 0x13d   :  { %v402_v34 = vpop.permute.xlu0 %401 }
 0x13f   :  { %v407_v40 = vpop.permute.xlu1 %406 }
 0x141   :  { %v412_v48 = vpop.permute.xlu0 %411 }
 0x143   :  { %v417_v50 = vpop.permute.xlu1 %416 }
 0x147   :  { %v912_v33 = vpop.permute.xlu1 %911 }
 0x198   :  { %v1730_v59 = vpop.f32.mrb[0].mxu0 }
 0x199   :  { %v260_v61 = vpop.f32.mrb[1].mxu0  ;;  %v421_v0 = vmul.f32 %v1730_v59, %v352_v54 }
 0x19a   :  { %v1731_v63 = vpop.f32.mrb[2].mxu0  ;;  %v419_v3 = vmul.f32 %v342_v53, %v260_v61  ;;  %v1854_v61 = vld [vmem:[#allocation8 + $0x28] sm:$0xff]  }
 0x19b   :  { %v422_v1 = vmul.f32 %v1731_v63, %v357_v56  ;;  %v263_v2 = vpop.f32.mrb[3].mxu0  ;;  %v1856_v63 = vld [vmem:[#allocation8 + $0x38] sm:$0xff]  }
 0x19c   :  { %v420_v4 = vmul.f32 %v347_v55, %v263_v2 }
 0x19d   :  { %v452_v6 = vpack.c.bf16 %v422_v1, %v421_v0  ;;  %v2338_v1 = vld [vmem:[#allocation11] ss:$0 sm:$0xff] }
 0x19e   :  { %v451_v8 = vpack.c.bf16 %v420_v4, %v419_v3 }
 0x1a0   :  { %v1734_v11 = vpop.f32.mrb[4].mxu0  ;;  %674 = vmatprep.mubr.bf16.mxu1 %v451_v8 }
 0x1a1   :  { %v276_v12 = vpop.f32.mrb[5].mxu0  ;;  %675 = vmatmul.mubr.bf16.vlgmr.msra.gmra.mrb[0].mxu1 %v1849_v7  ;;  %v425_v14 = vmul.f32 %v1734_v11, %v372_v60  ;;  %v1853_v60 = vld [vmem:[#allocation8 + $0x20] sm:$0xff]  }
 0x1a2   :  { %v1735_v13 = vpop.f32.mrb[6].mxu0  ;;  %682 = vmatprep.mubr.bf16.mxu1 %v452_v6  ;;  %v423_v17 = vmul.f32 %v362_v57, %v276_v12  ;;  %1777 = vmatpush3.bf16.msra.mxu1 %v1873_v29 }
 0x1a3   :  { %v426_v15 = vmul.f32 %v1735_v13, %v377_v62  ;;  %v279_v16 = vpop.f32.mrb[7].mxu0  ;;  %v1855_v62 = vld [vmem:[#allocation8 + $0x30] sm:$0xff]  }
 0x1a4   :  { %v424_v18 = vmul.f32 %v367_v58, %v279_v16  ;;  %v1852_v58 = vld [vmem:[#allocation8 + $0x18] sm:$0xff]  }
 0x1a5   :  { %v454_v20 = vpack.c.bf16 %v426_v15, %v425_v14 }
 0x1a6   :  { %v453_v24 = vpack.c.bf16 %v424_v18, %v423_v17 }
 0x1a8   :  { %v1738_v27 = vpop.f32.mrb[8].mxu0 }
 0x1a9   :  { %v292_v28 = vpop.f32.mrb[9].mxu0  ;;  %683 = vmatmul.mubr.bf16.gmra.mrb[4].mxu1 %v1850_v21  ;;  %v429_v35 = vmul.f32 %v1738_v27, %v392_v19 }
 0x1aa   :  { %v1739_v30 = vpop.f32.mrb[10].mxu0  ;;  %690 = vmatprep.mubr.bf16.mxu1 %v453_v24  ;;  %v427_v41 = vmul.f32 %v382_v9, %v292_v28 }
 0x1ab   :  { %v430_v38 = vmul.f32 %v1739_v30, %v397_v23  ;;  %v295_v39 = vpop.f32.mrb[11].mxu0 }
 0x1ac   :  { %v428_v43 = vmul.f32 %v387_v10, %v295_v39 }
 0x1ad   :  { %v456_v44 = vpack.c.bf16 %v430_v38, %v429_v35 }
 0x1ae   :  { %v455_v46 = vpack.c.bf16 %v428_v43, %v427_v41 }
 0x1b0   :  { %v1742_v47 = vpop.f32.mrb[12].mxu0 }
 0x1b1   :  { %v308_v49 = vpop.f32.mrb[13].mxu0  ;;  %691 = vmatmul.mubr.bf16.gmra.mrb[8].mxu1 %v1851_v45  ;;  %v433_v52 = vmul.f32 %v1742_v47, %v412_v48 }
 0x1b2   :  { %v1743_v51 = vpop.f32.mrb[14].mxu0  ;;  %698 = vmatprep.mubr.bf16.mxu1 %v454_v20  ;;  %v431_v55 = vmul.f32 %v402_v34, %v308_v49 }
 0x1b3   :  { %v434_v53 = vmul.f32 %v1743_v51, %v417_v50  ;;  %v311_v54 = vpop.f32.mrb[15].mxu0 }
 0x1b4   :  { %v432_v56 = vmul.f32 %v407_v40, %v311_v54 }
 0x1b5   :  { %v458_v57 = vpack.c.bf16 %v434_v53, %v433_v52 }
 0x1b6   :  { %v457_v59 = vpack.c.bf16 %v432_v56, %v431_v55 }
 0x1b9   :  { %699 = vmatmul.mubr.bf16.gmra.mrb[12].mxu1 %v1852_v58 }
 0x1ba   :  { %706 = vmatprep.mubr.bf16.mxu1 %v455_v46 }
 0x1c1   :  { %707 = vmatmul.mubr.bf16.gmra.mrb[16].mxu1 %v1853_v60 }
 0x1c2   :  { %714 = vmatprep.mubr.bf16.mxu1 %v456_v44 }
 0x1c9   :  { %715 = vmatmul.mubr.bf16.gmra.mrb[20].mxu1 %v1854_v61 }
 0x1ca   :  { %722 = vmatprep.mubr.bf16.mxu1 %v457_v59 }
 0x1d1   :  { %723 = vmatmul.mubr.bf16.gmra.mrb[24].mxu1 %v1855_v62 }
 0x1d2   :  { %730 = vmatprep.mubr.bf16.mxu1 %v458_v57 }
 0x1d9   :  { %731 = vmatmul.mubr.bf16.gmra.mrb[28].mxu1 %v1856_v63 }
 0x274   :  { %v1568_v0 = vpop.f32.mrb[0].mxu1 }
 0x275   :  { %v1569_v2 = vpop.f32.mrb[1].mxu1 }
 0x276   :  { %v1570_v3 = vadd.f32 %v1569_v2, %v1568_v0  ;;  %v1571_v4 = vpop.f32.mrb[2].mxu1 }
 0x277   :  { %v1572_v6 = vpop.f32.mrb[3].mxu1 }
 0x278   :  { %v677_v7 = vadd.f32 %v1570_v3, %v2338_v1  ;;  %v1573_v8 = vadd.f32 %v1572_v6, %v1571_v4 }
 0x27a   :  { %v680_v9 = vadd.f32 %v1573_v8, %v2338_v1  ;;  %v739_v10 = vmax.f32 %v677_v7, 0.0 }
 0x27c   :  { %v740_v11 = vmax.f32 %v680_v9, 0.0  ;;  %v1574_v12 = vpop.f32.mrb[4].mxu1 }
 0x27d   :  { %v1575_v13 = vpop.f32.mrb[5].mxu1 }
 0x27e   :  { %v1576_v14 = vadd.f32 %v1575_v13, %v1574_v12  ;;  %v1577_v15 = vpop.f32.mrb[6].mxu1  ;;  %v2342_v16 = vpack.c.bf16 %v740_v11, %v739_v10 }
 0x27f   :  { %v1578_v17 = vpop.f32.mrb[7].mxu1 }
 0x280   :  { %v685_v18 = vadd.f32 %v1576_v14, %v2338_v1  ;;  %v1579_v19 = vadd.f32 %v1578_v17, %v1577_v15  ;;  %1744 = vmatprep.subr.bf16.mxu0 %v2342_v16 }
 0x281   :  { %1745 = vmatpush3.bf16.msra.mxu0 %v2342_v16 }
 0x282   :  { %v688_v20 = vadd.f32 %v1579_v19, %v2338_v1  ;;  %v741_v21 = vmax.f32 %v685_v18, 0.0 }
 0x284   :  { %v742_v23 = vmax.f32 %v688_v20, 0.0  ;;  %v1580_v24 = vpop.f32.mrb[8].mxu1 }
 0x285   :  { %v1581_v27 = vpop.f32.mrb[9].mxu1 }
 0x286   :  { %v1582_v28 = vadd.f32 %v1581_v27, %v1580_v24  ;;  %v1583_v30 = vpop.f32.mrb[10].mxu1  ;;  %v2348_v34 = vpack.c.bf16 %v742_v23, %v741_v21 }
 0x287   :  { %v1584_v35 = vpop.f32.mrb[11].mxu1 }
 0x288   :  { %v693_v38 = vadd.f32 %v1582_v28, %v2338_v1  ;;  %v1585_v39 = vadd.f32 %v1584_v35, %v1583_v30  ;;  %1746 = vmatprep.subr.bf16.mxu0 %v2348_v34 }
 0x289   :  { %1747 = vmatpush3.bf16.msra.mxu0 %v2348_v34 }
 0x28a   :  { %v696_v40 = vadd.f32 %v1585_v39, %v2338_v1  ;;  %v743_v41 = vmax.f32 %v693_v38, 0.0 }
 0x28c   :  { %v744_v43 = vmax.f32 %v696_v40, 0.0  ;;  %v1586_v44 = vpop.f32.mrb[12].mxu1 }
 0x28d   :  { %v1587_v45 = vpop.f32.mrb[13].mxu1 }
 0x28e   :  { %v1588_v46 = vadd.f32 %v1587_v45, %v1586_v44  ;;  %v1589_v47 = vpop.f32.mrb[14].mxu1  ;;  %v2354_v48 = vpack.c.bf16 %v744_v43, %v743_v41 }
 0x28f   :  { %v1590_v49 = vpop.f32.mrb[15].mxu1 }
 0x290   :  { %v701_v50 = vadd.f32 %v1588_v46, %v2338_v1  ;;  %v1591_v51 = vadd.f32 %v1590_v49, %v1589_v47  ;;  %1748 = vmatprep.subr.bf16.mxu0 %v2354_v48 }
 0x291   :  { %1749 = vmatpush3.bf16.msra.mxu0 %v2354_v48 }
 0x292   :  { %v704_v52 = vadd.f32 %v1591_v51, %v2338_v1  ;;  %v745_v53 = vmax.f32 %v701_v50, 0.0  ;;  %v1857_v51 = vld [vmem:[#allocation12 + $0x40] sm:$0xff]  }
 0x294   :  { %v746_v54 = vmax.f32 %v704_v52, 0.0  ;;  %v1592_v55 = vpop.f32.mrb[16].mxu1  ;;  %v1858_v52 = vld [vmem:[#allocation12] sm:$0xff]  }
 0x295   :  { %v1593_v56 = vpop.f32.mrb[17].mxu1 }
 0x296   :  { %v1594_v57 = vadd.f32 %v1593_v56, %v1592_v55  ;;  %v1595_v58 = vpop.f32.mrb[18].mxu1  ;;  %v2360_v59 = vpack.c.bf16 %v746_v54, %v745_v53  ;;  %v1859_v53 = vld [vmem:[#allocation12 + $0x48] sm:$0xff]   ;;  %v1861_v54 = vld [vmem:[#allocation12 + $0x50] sm:$0xff]   ;;  %v1863_v56 = vld [vmem:[#allocation12 + $0x58] sm:$0xff]  }
 0x297   :  { %v1596_v60 = vpop.f32.mrb[19].mxu1  ;;  %v1862_v55 = vld [vmem:[#allocation12 + $0x10] sm:$0xff]  }
 0x298   :  { %v709_v61 = vadd.f32 %v1594_v57, %v2338_v1  ;;  %v1597_v62 = vadd.f32 %v1596_v60, %v1595_v58  ;;  %1750 = vmatprep.subr.bf16.mxu0 %v2360_v59  ;;  %v1867_v57 = vld [vmem:[#allocation12 + $0x68] sm:$0xff]   ;;  %v1871_v58 = vld [vmem:[#allocation12 + $0x78] sm:$0xff]  }
 0x299   :  { %1751 = vmatpush3.bf16.msra.mxu0 %v2360_v59  ;;  %v1872_v60 = vld [vmem:[#allocation12 + $0x38] sm:$0xff]  }
 0x29a   :  { %v712_v63 = vadd.f32 %v1597_v62, %v2338_v1  ;;  %v747_v0 = vmax.f32 %v709_v61, 0.0  ;;  %v907_v61 = vpop.permute.xlu0 %906  ;;  %v922_v62 = vpop.permute.xlu1 %921 }
 0x29c   :  { %v748_v2 = vmax.f32 %v712_v63, 0.0  ;;  %v1598_v3 = vpop.f32.mrb[20].mxu1 }
 0x29d   :  { %v1599_v4 = vpop.f32.mrb[21].mxu1 }
 0x29e   :  { %v1600_v6 = vadd.f32 %v1599_v4, %v1598_v3  ;;  %v1601_v7 = vpop.f32.mrb[22].mxu1  ;;  %v2366_v8 = vpack.c.bf16 %v748_v2, %v747_v0  ;;  %v932_v0 = vpop.permute.xlu1 %931 }
 0x29f   :  { %v1602_v9 = vpop.f32.mrb[23].mxu1 }
 0x2a0   :  { %v717_v10 = vadd.f32 %v1600_v6, %v2338_v1  ;;  %v1603_v11 = vadd.f32 %v1602_v9, %v1601_v7  ;;  %1752 = vmatprep.subr.bf16.mxu0 %v2366_v8 }
 0x2a1   :  { %1753 = vmatpush3.bf16.msra.mxu0 %v2366_v8 }
 0x2a2   :  { %v720_v12 = vadd.f32 %v1603_v11, %v2338_v1  ;;  %v749_v13 = vmax.f32 %v717_v10, 0.0  ;;  %v942_v6 = vpop.permute.xlu1 %941 }
 0x2a4   :  { %v750_v14 = vmax.f32 %v720_v12, 0.0  ;;  %v1604_v15 = vpop.f32.mrb[24].mxu1 }
 0x2a5   :  { %v1605_v17 = vpop.f32.mrb[25].mxu1 }
 0x2a6   :  { %v1606_v18 = vadd.f32 %v1605_v17, %v1604_v15  ;;  %v1607_v19 = vpop.f32.mrb[26].mxu1  ;;  %v2372_v20 = vpack.c.bf16 %v750_v14, %v749_v13 }
 0x2a7   :  { %v1608_v21 = vpop.f32.mrb[27].mxu1 }
 0x2a8   :  { %v725_v23 = vadd.f32 %v1606_v18, %v2338_v1  ;;  %v1609_v24 = vadd.f32 %v1608_v21, %v1607_v19  ;;  %1754 = vmatprep.subr.bf16.mxu0 %v2372_v20  ;;  %v952_v18 = vpop.permute.xlu1 %951 }
 0x2a9   :  { %1755 = vmatpush3.bf16.msra.mxu0 %v2372_v20 }
 0x2aa   :  { %v728_v27 = vadd.f32 %v1609_v24, %v2338_v1  ;;  %v751_v28 = vmax.f32 %v725_v23, 0.0 }
 0x2ac   :  { %v752_v30 = vmax.f32 %v728_v27, 0.0  ;;  %v1610_v35 = vpop.f32.mrb[28].mxu1 }
 0x2ad   :  { %v1611_v38 = vpop.f32.mrb[29].mxu1 }
 0x2ae   :  { %v1612_v39 = vadd.f32 %v1611_v38, %v1610_v35  ;;  %v1613_v40 = vpop.f32.mrb[30].mxu1  ;;  %v2378_v41 = vpack.c.bf16 %v752_v30, %v751_v28 }
 0x2af   :  { %v1614_v43 = vpop.f32.mrb[31].mxu1 }
 0x2b0   :  { %v733_v44 = vadd.f32 %v1612_v39, %v2338_v1  ;;  %v1615_v45 = vadd.f32 %v1614_v43, %v1613_v40  ;;  %1756 = vmatprep.subr.bf16.mxu0 %v2378_v41  ;;  %v962_v40 = vpop.permute.xlu1 %961 }
 0x2b1   :  { %1757 = vmatpush3.bf16.msra.mxu0 %v2378_v41 }
 0x2b2   :  { %v736_v46 = vadd.f32 %v1615_v45, %v2338_v1  ;;  %v753_v47 = vmax.f32 %v733_v44, 0.0  ;;  %v1860_v1 = vld [vmem:[#allocation12 + $0x8] sm:$0xff]  }
 0x2b4   :  { %v754_v49 = vmax.f32 %v736_v46, 0.0 }
 0x2b6   :  { %v2384_v50 = vpack.c.bf16 %v754_v49, %v753_v47 }
 0x2b8   :  { %1758 = vmatprep.subr.bf16.mxu0 %v2384_v50 }
 0x2b9   :  { %1759 = vmatpush3.bf16.msra.mxu0 %v2384_v50 }
 0x2ba   :  { %1632 = vmatprep.subr.bf16.mxu0 %v1857_v51 }
 0x2bc   :  { %1761 = vmatmul.mubr.bf16.vlgmr.msra.gmra.mrb[16].mxu0 %v155_v25  ;;  %v1865_v25 = vld [vmem:[#allocation12 + $0x60] sm:$0xff]  }
 0x2bd   :  { %1764 = vmatprep.mubr.bf16.mxu0 %v156_v26  ;;  %1633 = vmatpush3.bf16.msra.mxu0 %v1858_v52  ;;  %v1866_v26 = vld [vmem:[#allocation12 + $0x20] sm:$0xff]   ;;  %v972_v52 = vpop.permute.xlu1 %971 }
 0x2be   :  { %1634 = vmatprep.subr.bf16.mxu0 %v1859_v53 }
 0x2c1   :  { %1635 = vmatpush3.bf16.msra.mxu0 %v1860_v1 }
 0x2c2   :  { %1636 = vmatprep.subr.bf16.mxu0 %v1861_v54 }
 0x2c4   :  { %1765 = vmatmul.mubr.bf16.gmra.mrb[20].mxu0 %v157_v31  ;;  %v1869_v31 = vld [vmem:[#allocation12 + $0x70] sm:$0xff]  }
 0x2c5   :  { %1768 = vmatprep.mubr.bf16.mxu0 %v158_v32  ;;  %1637 = vmatpush3.bf16.msra.mxu0 %v1862_v55  ;;  %v1870_v32 = vld [vmem:[#allocation12 + $0x30] sm:$0xff]  }
 0x2c6   :  { %1638 = vmatprep.subr.bf16.mxu0 %v1863_v56 }
 0x2c9   :  { %1639 = vmatpush3.bf16.msra.mxu0 %v1864_v5 }
 0x2ca   :  { %1640 = vmatprep.subr.bf16.mxu0 %v1865_v25 }
 0x2cc   :  { %1769 = vmatmul.mubr.bf16.gmra.mrb[24].mxu0 %v159_v36  ;;  %v1874_v36 = vld [vmem:[#allocation15 + $0x8] sm:$0xff]  }
 0x2cd   :  { %1772 = vmatprep.mubr.bf16.mxu0 %v160_v37  ;;  %1641 = vmatpush3.bf16.msra.mxu0 %v1866_v26  ;;  %v1875_v37 = vld [vmem:[#allocation15 + $0x10] sm:$0xff]   ;;  %v982_v26 = vpop.permute.xlu1 %981 }
 0x2ce   :  { %1642 = vmatprep.subr.bf16.mxu0 %v1867_v57  ;;  %1778 = vmatprep.subr.bf16.mxu1 %v1874_v36 }
 0x2cf   :  { %1779 = vmatpush3.bf16.msra.mxu1 %v1874_v36  ;;  %v1877_v36 = vld [vmem:[#allocation15 + $0x20] sm:$0xff]  }
 0x2d0   :  { %1780 = vmatprep.subr.bf16.mxu1 %v1875_v37 }
 0x2d1   :  { %1643 = vmatpush3.bf16.msra.mxu0 %v1868_v22 }
 0x2d2   :  { %1644 = vmatprep.subr.bf16.mxu0 %v1869_v31 }
 0x2d3   :  { %1781 = vmatpush3.bf16.msra.mxu1 %v1875_v37  ;;  %v1878_v37 = vld [vmem:[#allocation15 + $0x28] sm:$0xff]  }
 0x2d4   :  { %1773 = vmatmul.mubr.bf16.gmra.mrb[28].mxu0 %v161_v42  ;;  %v917_v42 = vpop.permute.xlu0 %916 }
 0x2d5   :  { %1645 = vmatpush3.bf16.msra.mxu0 %v1870_v32 }
 0x2d6   :  { %1646 = vmatprep.subr.bf16.mxu0 %v1871_v58 }
 0x2d8   :  { %v927_v63 = vpop.permute.xlu0 %926 }
 0x2d9   :  { %1647 = vmatpush3.bf16.msra.mxu0 %v1872_v60 }
 0x2dc   :  { %v937_v3 = vpop.permute.xlu0 %936 }
 0x2e0   :  { %v947_v17 = vpop.permute.xlu0 %946 }
 0x2e4   :  { %v957_v38 = vpop.permute.xlu0 %956 }
 0x2e8   :  { %v967_v47 = vpop.permute.xlu0 %966 }
 0x2ec   :  { %v977_v5 = vpop.permute.xlu0 %976 }
 0x38f   :  { %v1762_v2 = vpop.f32.mrb[16].mxu0 }
 0x390   :  { %v825_v4 = vpop.f32.mrb[17].mxu0  ;;  %v986_v9 = vmul.f32 %v1762_v2, %v917_v42 }
 0x391   :  { %v1763_v7 = vpop.f32.mrb[18].mxu0  ;;  %v984_v12 = vmul.f32 %v907_v61, %v825_v4 }
 0x392   :  { %v987_v10 = vmul.f32 %v1763_v7, %v922_v62  ;;  %v828_v11 = vpop.f32.mrb[19].mxu0 }
 0x393   :  { %v985_v13 = vmul.f32 %v912_v33, %v828_v11 }
 0x394   :  { %v1009_v14 = vpack.c.bf16 %v987_v10, %v986_v9 }
 0x395   :  { %v1008_v15 = vpack.c.bf16 %v985_v13, %v984_v12 }
 0x397   :  { %v1766_v19 = vpop.f32.mrb[20].mxu0  ;;  %1183 = vmatprep.mubr.bf16.mxu0 %v1008_v15 }
 0x398   :  { %v841_v21 = vpop.f32.mrb[21].mxu0  ;;  %1184 = vmatmul.mubr.bf16.vlgmr.msra.gmra.mrb[32].mxu0 %v2342_v16  ;;  %v990_v24 = vmul.f32 %v1766_v19, %v937_v3 }
 0x399   :  { %v1767_v23 = vpop.f32.mrb[22].mxu0  ;;  %1191 = vmatprep.mubr.bf16.mxu0 %v1009_v14  ;;  %v988_v30 = vmul.f32 %v927_v63, %v841_v21 }
 0x39a   :  { %v991_v27 = vmul.f32 %v1767_v23, %v942_v6  ;;  %v844_v28 = vpop.f32.mrb[23].mxu0 }
 0x39b   :  { %v989_v35 = vmul.f32 %v932_v0, %v844_v28 }
 0x39c   :  { %v1011_v39 = vpack.c.bf16 %v991_v27, %v990_v24 }
 0x39d   :  { %v1010_v43 = vpack.c.bf16 %v989_v35, %v988_v30 }
 0x39f   :  { %v1770_v44 = vpop.f32.mrb[24].mxu0 }
 0x3a0   :  { %v857_v45 = vpop.f32.mrb[25].mxu0  ;;  %1192 = vmatmul.mubr.bf16.gmra.mrb[36].mxu0 %v2348_v34  ;;  %v994_v49 = vmul.f32 %v1770_v44, %v957_v38 }
 0x3a1   :  { %v1771_v46 = vpop.f32.mrb[26].mxu0  ;;  %1199 = vmatprep.mubr.bf16.mxu0 %v1010_v43  ;;  %v992_v53 = vmul.f32 %v947_v17, %v857_v45 }
 0x3a2   :  { %v995_v16 = vmul.f32 %v1771_v46, %v962_v40  ;;  %v860_v51 = vpop.f32.mrb[27].mxu0 }
 0x3a3   :  { %v993_v1 = vmul.f32 %v952_v18, %v860_v51 }
 0x3a4   :  { %v1013_v54 = vpack.c.bf16 %v995_v16, %v994_v49 }
 0x3a5   :  { %v1012_v55 = vpack.c.bf16 %v993_v1, %v992_v53 }
 0x3a7   :  { %v1774_v56 = vpop.f32.mrb[28].mxu0 }
 0x3a8   :  { %v873_v25 = vpop.f32.mrb[29].mxu0  ;;  %1200 = vmatmul.mubr.bf16.gmra.mrb[40].mxu0 %v2354_v48  ;;  %v998_v34 = vmul.f32 %v1774_v56, %v977_v5  ;;  %v1876_v48 = vld [vmem:[#allocation15 + $0x18] sm:$0xff]  }
 0x3a9   :  { %v1775_v57 = vpop.f32.mrb[30].mxu0  ;;  %1207 = vmatprep.mubr.bf16.mxu0 %v1011_v39  ;;  %v996_v32 = vmul.f32 %v967_v47, %v873_v25  ;;  %1782 = vmatprep.subr.bf16.mxu1 %v1876_v48 }
 0x3aa   :  { %v999_v22 = vmul.f32 %v1775_v57, %v982_v26  ;;  %v876_v31 = vpop.f32.mrb[31].mxu0  ;;  %1783 = vmatpush3.bf16.msra.mxu1 %v1876_v48 }
 0x3ab   :  { %v997_v58 = vmul.f32 %v972_v52, %v876_v31  ;;  %1784 = vmatprep.subr.bf16.mxu1 %v1877_v36 }
 0x3ac   :  { %v1015_v60 = vpack.c.bf16 %v999_v22, %v998_v34 }
 0x3ad   :  { %v1014_v29 = vpack.c.bf16 %v997_v58, %v996_v32 }
 0x3ae   :  { %1785 = vmatpush3.bf16.msra.mxu1 %v1877_v36 }
 0x3af   :  { %1786 = vmatprep.subr.bf16.mxu1 %v1878_v37 }
 0x3b0   :  { %1208 = vmatmul.mubr.bf16.gmra.mrb[44].mxu0 %v2360_v59  ;;  %v1879_v59 = vld [vmem:[#allocation15 + $0x30] sm:$0xff]  }
 0x3b1   :  { %1215 = vmatprep.mubr.bf16.mxu0 %v1012_v55 }
 0x3b2   :  { %1787 = vmatpush3.bf16.msra.mxu1 %v1878_v37 }
 0x3b3   :  { %1788 = vmatprep.subr.bf16.mxu1 %v1879_v59 }
 0x3b6   :  { %1789 = vmatpush3.bf16.msra.mxu1 %v1879_v59 }
 0x3b8   :  { %1216 = vmatmul.mubr.bf16.gmra.mrb[48].mxu0 %v2366_v8  ;;  %v1880_v8 = vld [vmem:[#allocation15 + $0x38] sm:$0xff]  }
 0x3b9   :  { %1223 = vmatprep.mubr.bf16.mxu0 %v1013_v54  ;;  %1790 = vmatprep.subr.bf16.mxu1 %v1880_v8 }
 0x3ba   :  { %1791 = vmatpush3.bf16.msra.mxu1 %v1880_v8 }
 0x3c0   :  { %1224 = vmatmul.mubr.bf16.gmra.mrb[52].mxu0 %v2372_v20 }
 0x3c1   :  { %1231 = vmatprep.mubr.bf16.mxu0 %v1014_v29 }
 0x3c8   :  { %1232 = vmatmul.mubr.bf16.gmra.mrb[56].mxu0 %v2378_v41  ;;  %v2410_v41 = vld [vmem:[#allocation14] ss:$0 sm:$0xff] }
 0x3c9   :  { %1239 = vmatprep.mubr.bf16.mxu0 %v1015_v60 }
 0x3d0   :  { %1240 = vmatmul.mubr.bf16.gmra.mrb[60].mxu0 %v2384_v50 }
 0x46b   :  { %v1648_v20 = vpop.f32.mrb[32].mxu0 }
 0x46c   :  { %v1649_v61 = vpop.f32.mrb[33].mxu0 }
 0x46d   :  { %v1650_v50 = vadd.f32 %v1649_v61, %v1648_v20  ;;  %v1651_v33 = vpop.f32.mrb[34].mxu0 }
 0x46e   :  { %v1652_v42 = vpop.f32.mrb[35].mxu0 }
 0x46f   :  { %v1186_v62 = vadd.f32 %v1650_v50, %v2410_v41  ;;  %v1653_v63 = vadd.f32 %v1652_v42, %v1651_v33 }
 0x471   :  { %v1189_v0 = vadd.f32 %v1653_v63, %v2410_v41  ;;  %v1248_v2 = vmax.f32 %v1186_v62, 0.0 }
 0x473   :  { %v1249_v3 = vmax.f32 %v1189_v0, 0.0  ;;  %v1654_v4 = vpop.f32.mrb[36].mxu0 }
 0x474   :  { %v1655_v6 = vpop.f32.mrb[37].mxu0 }
 0x475   :  { %v1656_v7 = vadd.f32 %v1655_v6, %v1654_v4  ;;  %v1657_v9 = vpop.f32.mrb[38].mxu0  ;;  %v1264_v10 = vpack.c.bf16 %v1249_v3, %v1248_v2 }
 0x476   :  { %v1658_v11 = vpop.f32.mrb[39].mxu0 }
 0x477   :  { %v1194_v12 = vadd.f32 %v1656_v7, %v2410_v41  ;;  %v1659_v13 = vadd.f32 %v1658_v11, %v1657_v9  ;;  %1792 = vmatprep.mubr.bf16.mxu1 %v1264_v10 }
 0x479   :  { %v1197_v14 = vadd.f32 %v1659_v13, %v2410_v41  ;;  %v1250_v15 = vmax.f32 %v1194_v12, 0.0 }
 0x47b   :  { %v1251_v17 = vmax.f32 %v1197_v14, 0.0  ;;  %v1660_v18 = vpop.f32.mrb[40].mxu0 }
 0x47c   :  { %v1661_v19 = vpop.f32.mrb[41].mxu0 }
 0x47d   :  { %v1265_v21 = vpack.c.bf16 %v1251_v17, %v1250_v15  ;;  %v1662_v23 = vadd.f32 %v1661_v19, %v1660_v18  ;;  %v1663_v24 = vpop.f32.mrb[42].mxu0 }
 0x47e   :  { %v1664_v27 = vpop.f32.mrb[43].mxu0 }
 0x47f   :  { %v1202_v28 = vadd.f32 %v1662_v23, %v2410_v41  ;;  %v1665_v30 = vadd.f32 %v1664_v27, %v1663_v24  ;;  %1793 = vmatmul.mubr.bf16.vlgmr.msra.gmra.mrb[32].mxu1 %v1265_v21  ;;  %v1527_v24 = vld [vmem:[#allocation17] ss:$0 sm:$0xff] }
 0x481   :  { %v1205_v35 = vadd.f32 %v1665_v30, %v2410_v41  ;;  %v1252_v38 = vmax.f32 %v1202_v28, 0.0 }
 0x483   :  { %v1253_v39 = vmax.f32 %v1205_v35, 0.0  ;;  %v1666_v40 = vpop.f32.mrb[44].mxu0 }
 0x484   :  { %v1667_v43 = vpop.f32.mrb[45].mxu0 }
 0x485   :  { %v1668_v44 = vadd.f32 %v1667_v43, %v1666_v40  ;;  %v1669_v45 = vpop.f32.mrb[46].mxu0  ;;  %v1266_v46 = vpack.c.bf16 %v1253_v39, %v1252_v38 }
 0x486   :  { %v1670_v47 = vpop.f32.mrb[47].mxu0 }
 0x487   :  { %v1210_v49 = vadd.f32 %v1668_v44, %v2410_v41  ;;  %v1671_v16 = vadd.f32 %v1670_v47, %v1669_v45  ;;  %1796 = vmatprep.mubr.bf16.mxu1 %v1266_v46 }
 0x489   :  { %v1213_v51 = vadd.f32 %v1671_v16, %v2410_v41  ;;  %v1254_v52 = vmax.f32 %v1210_v49, 0.0 }
 0x48b   :  { %v1255_v53 = vmax.f32 %v1213_v51, 0.0  ;;  %v1672_v1 = vpop.f32.mrb[48].mxu0 }
 0x48c   :  { %v1673_v54 = vpop.f32.mrb[49].mxu0 }
 0x48d   :  { %v1674_v55 = vadd.f32 %v1673_v54, %v1672_v1  ;;  %v1675_v56 = vpop.f32.mrb[50].mxu0  ;;  %v1267_v5 = vpack.c.bf16 %v1255_v53, %v1254_v52 }
 0x48e   :  { %v1676_v25 = vpop.f32.mrb[51].mxu0 }
 0x48f   :  { %v1218_v26 = vadd.f32 %v1674_v55, %v2410_v41  ;;  %v1677_v57 = vadd.f32 %v1676_v25, %v1675_v56  ;;  %1797 = vmatmul.mubr.bf16.gmra.mrb[36].mxu1 %v1267_v5 }
 0x491   :  { %v1221_v34 = vadd.f32 %v1677_v57, %v2410_v41  ;;  %v1256_v22 = vmax.f32 %v1218_v26, 0.0 }
 0x493   :  { %v1257_v31 = vmax.f32 %v1221_v34, 0.0  ;;  %v1678_v32 = vpop.f32.mrb[52].mxu0 }
 0x494   :  { %v1679_v58 = vpop.f32.mrb[53].mxu0 }
 0x495   :  { %v1680_v60 = vadd.f32 %v1679_v58, %v1678_v32  ;;  %v1681_v29 = vpop.f32.mrb[54].mxu0  ;;  %v1268_v48 = vpack.c.bf16 %v1257_v31, %v1256_v22 }
 0x496   :  { %v1682_v36 = vpop.f32.mrb[55].mxu0 }
 0x497   :  { %v1226_v37 = vadd.f32 %v1680_v60, %v2410_v41  ;;  %v1683_v59 = vadd.f32 %v1682_v36, %v1681_v29  ;;  %1800 = vmatprep.mubr.bf16.mxu1 %v1268_v48 }
 0x499   :  { %v1229_v8 = vadd.f32 %v1683_v59, %v2410_v41  ;;  %v1258_v20 = vmax.f32 %v1226_v37, 0.0 }
 0x49b   :  { %v1259_v61 = vmax.f32 %v1229_v8, 0.0  ;;  %v1684_v50 = vpop.f32.mrb[56].mxu0 }
 0x49c   :  { %v1685_v33 = vpop.f32.mrb[57].mxu0 }
 0x49d   :  { %v1686_v42 = vadd.f32 %v1685_v33, %v1684_v50  ;;  %v1687_v62 = vpop.f32.mrb[58].mxu0  ;;  %v1269_v63 = vpack.c.bf16 %v1259_v61, %v1258_v20 }
 0x49e   :  { %v1688_v0 = vpop.f32.mrb[59].mxu0 }
 0x49f   :  { %v1234_v2 = vadd.f32 %v1686_v42, %v2410_v41  ;;  %v1689_v3 = vadd.f32 %v1688_v0, %v1687_v62  ;;  %1801 = vmatmul.mubr.bf16.gmra.mrb[40].mxu1 %v1269_v63 }
 0x4a1   :  { %v1237_v4 = vadd.f32 %v1689_v3, %v2410_v41  ;;  %v1260_v6 = vmax.f32 %v1234_v2, 0.0 }
 0x4a3   :  { %v1261_v7 = vmax.f32 %v1237_v4, 0.0  ;;  %v1690_v9 = vpop.f32.mrb[60].mxu0 }
 0x4a4   :  { %v1691_v10 = vpop.f32.mrb[61].mxu0 }
 0x4a5   :  { %v1692_v11 = vadd.f32 %v1691_v10, %v1690_v9  ;;  %v1693_v12 = vpop.f32.mrb[62].mxu0  ;;  %v1270_v13 = vpack.c.bf16 %v1261_v7, %v1260_v6 }
 0x4a6   :  { %v1694_v14 = vpop.f32.mrb[63].mxu0 }
 0x4a7   :  { %v1242_v15 = vadd.f32 %v1692_v11, %v2410_v41  ;;  %v1695_v17 = vadd.f32 %v1694_v14, %v1693_v12  ;;  %1804 = vmatprep.mubr.bf16.mxu1 %v1270_v13 }
 0x4a9   :  { %v1245_v18 = vadd.f32 %v1695_v17, %v2410_v41  ;;  %v1262_v19 = vmax.f32 %v1242_v15, 0.0 }
 0x4ab   :  { %v1263_v21 = vmax.f32 %v1245_v18, 0.0 }
 0x4ad   :  { %v1271_v23 = vpack.c.bf16 %v1263_v21, %v1262_v19 }
 0x4af   :  { %1805 = vmatmul.mubr.bf16.gmra.mrb[44].mxu1 %v1271_v23 }
 0x552   :  { %v1794_v27 = vpop.f32.mrb[32].mxu1 }
 0x553   :  { %v1386_v28 = vadd.f32 %v1794_v27, %v1527_v24  ;;  %v1377_v30 = vpop.f32.mrb[33].mxu1 }
 0x554   :  { %v1378_v35 = vadd.f32 %v1527_v24, %v1377_v30  ;;  %v1795_v38 = vpop.f32.mrb[34].mxu1 }
 0x555   :  { %1442 = vst [vmem:[#allocation18 + $0x10] sm:$0xff] %v1386_v28  ;;  %v1389_v39 = vadd.f32 %v1795_v38, %v1527_v24  ;;  %v1380_v40 = vpop.f32.mrb[35].mxu1 }
 0x556   :  { %1440 = vst [vmem:[#allocation18] sm:$0xff] %v1378_v35  ;;  %v1381_v43 = vadd.f32 %v1527_v24, %v1380_v40 }
 0x557   :  { %1443 = vst [vmem:[#allocation18 + $0x18] sm:$0xff] %v1389_v39 }
 0x558   :  { %1441 = vst [vmem:[#allocation18 + $0x8] sm:$0xff] %v1381_v43 }
 0x562   :  { %v1798_v44 = vpop.f32.mrb[36].mxu1 }
 0x563   :  { %v1402_v45 = vadd.f32 %v1798_v44, %v1527_v24  ;;  %v1393_v41 = vpop.f32.mrb[37].mxu1 }
 0x564   :  { %v1394_v46 = vadd.f32 %v1527_v24, %v1393_v41  ;;  %v1799_v47 = vpop.f32.mrb[38].mxu1 }
 0x565   :  { %1446 = vst [vmem:[#allocation18 + $0x30] sm:$0xff] %v1402_v45  ;;  %v1405_v49 = vadd.f32 %v1799_v47, %v1527_v24  ;;  %v1396_v16 = vpop.f32.mrb[39].mxu1 }
 0x566   :  { %1444 = vst [vmem:[#allocation18 + $0x20] sm:$0xff] %v1394_v46  ;;  %v1397_v51 = vadd.f32 %v1527_v24, %v1396_v16 }
 0x567   :  { %1447 = vst [vmem:[#allocation18 + $0x38] sm:$0xff] %v1405_v49 }
 0x568   :  { %1445 = vst [vmem:[#allocation18 + $0x28] sm:$0xff] %v1397_v51 }
 0x572   :  { %v1802_v52 = vpop.f32.mrb[40].mxu1 }
 0x573   :  { %v1418_v53 = vadd.f32 %v1802_v52, %v1527_v24  ;;  %v1409_v1 = vpop.f32.mrb[41].mxu1 }
 0x574   :  { %v1410_v54 = vadd.f32 %v1527_v24, %v1409_v1  ;;  %v1803_v55 = vpop.f32.mrb[42].mxu1 }
 0x575   :  { %1450 = vst [vmem:[#allocation18 + $0x50] sm:$0xff] %v1418_v53  ;;  %v1421_v56 = vadd.f32 %v1803_v55, %v1527_v24  ;;  %v1412_v5 = vpop.f32.mrb[43].mxu1 }
 0x576   :  { %1448 = vst [vmem:[#allocation18 + $0x40] sm:$0xff] %v1410_v54  ;;  %v1413_v25 = vadd.f32 %v1527_v24, %v1412_v5 }
 0x577   :  { %1451 = vst [vmem:[#allocation18 + $0x58] sm:$0xff] %v1421_v56 }
 0x578   :  { %1449 = vst [vmem:[#allocation18 + $0x48] sm:$0xff] %v1413_v25 }
 0x582   :  { %v1806_v26 = vpop.f32.mrb[44].mxu1 }
 0x583   :  { %v1434_v57 = vadd.f32 %v1806_v26, %v1527_v24  ;;  %v1425_v34 = vpop.f32.mrb[45].mxu1 }
 0x584   :  { %v1426_v22 = vadd.f32 %v1527_v24, %v1425_v34  ;;  %v1807_v31 = vpop.f32.mrb[46].mxu1 }
 0x585   :  { %1454 = vst [vmem:[#allocation18 + $0x70] sm:$0xff] %v1434_v57  ;;  %v1437_v32 = vadd.f32 %v1807_v31, %v1527_v24  ;;  %v1428_v58 = vpop.f32.mrb[47].mxu1 }
 0x586   :  { %1452 = vst [vmem:[#allocation18 + $0x60] sm:$0xff] %v1426_v22  ;;  %v1429_v60 = vadd.f32 %v1527_v24, %v1428_v58 }
 0x587   :  { %1455 = vst [vmem:[#allocation18 + $0x78] sm:$0xff] %v1437_v32 }
 0x588   :  { %1453 = vst [vmem:[#allocation18 + $0x68] sm:$0xff] %v1429_v60 }
 0x589   :  { %2090 = shalt.err (!%p2087_p6)
}
 0x58a   :  { %s2091_s17 = scalar_lea.hbm %s2452_s9, 2048 }
 0x58b   :  { %p2092_p7 = scmp.ne.s32.totalorder %s2452_s9, %s2091_s17  ;;  %p2095_p8 = scmp.lt.u32.totalorder %s2091_s17, %s2452_s9 }
 0x58d   :  { %p2097_p9 = pnand %p2095_p8, %p2092_p7 }
 0x58f   :  { %2100 = shalt.err (!%p2097_p9)
}
 0x590   :  { %1467 = dma.vmem_to_hbm [thread:$0]  %s1462_s10, 2048, %s2452_s9, [#allocation5], %s2114_s19, %s2114_s19, %s2115_s20  }
 0x591   :  { %2111 = dma.done.wait [#allocation5], 2048  }
 0x592   :  { %2112 = vsyncadd [#allocation5], 4294965248 }
 0x593   :  { %1471 = vsyncpa [#allocation4], 1 }
 0x594   :  { %1472 = vsyncpa [#allocation7], 1 }
 0x595   :  { %1473 = vsyncpa [#allocation10], 1 }
 0x596   :  { %1474 = vsyncpa [#allocation13], 1 }
 0x597   :  { %1475 = vsyncpa [#allocation16], 1 }
 0x598   :  { %1476 = vsyncpa [#allocation5], 1 }

</bundles_post_ra>
